<compile_context>
chip_gen: v7x
topology: tpu7x:2x2x1
jax: 0.10.0
libtpu: 0.0.40
codegen_flags: <defaults>
</compile_context>

<pallas_src>
import jax
import jax.numpy as jnp
from jax import lax
from jax.experimental import pallas as pl
from jax.experimental.pallas import tpu as pltpu

# --- hyper-parameters (kwargs of StochaPolicy.__init__) --------------------
OBS_DIM = 16
ACT_DIM = 8
HIDDEN_SIZES = (32, 32)
MIN_LOG_STD = -20.0
MAX_LOG_STD = 2.0
# hidden_activation = 'tanh', output_activation = 'identity'

H1, H2 = HIDDEN_SIZES
OUT_DIM = 2 * ACT_DIM
MAX_TILE_B = 1024          # large batch tile; per-tile VMEM is tiny (<1 MiB)


def _stocha_policy_kernel(obs_ref, w1_ref, b1_ref, w2_ref, b2_ref, w3_ref, b3_ref,
                          out_ref):
    x = obs_ref[...]
    # Fused chain: columns [:H1]/[H1:] of h carry the mean / log_std branches.
    h = jnp.tanh(jnp.dot(x, w1_ref[...], preferred_element_type=jnp.float32)
                 + b1_ref[...])
    h = jnp.tanh(jnp.dot(h, w2_ref[...], preferred_element_type=jnp.float32)
                 + b2_ref[...])
    z = jnp.dot(h, w3_ref[...], preferred_element_type=jnp.float32) + b3_ref[...]
    # z[:, :ACT_DIM] is the mean (identity output activation);
    # z[:, ACT_DIM:] is log_std -> exp(clip(.)).  Select by lane index so the
    # store stays a single full-tile write.
    std = jnp.exp(jnp.clip(z, MIN_LOG_STD, MAX_LOG_STD))
    col = lax.broadcasted_iota(jnp.int32, z.shape, 1)
    out_ref[...] = jnp.where(col >= ACT_DIM, std, z)


def _round_up(x, m):
    return (x + m - 1) // m * m


def pack_params(params):
    """Fuse the two separate MLPs into one 3-matmul chain (done once, offline)."""
    f32 = jnp.float32
    w1 = jnp.concatenate([params["mw1"], params["sw1"]], axis=1)           # [OBS, 2*H1]
    b1 = jnp.concatenate([params["mb1"], params["sb1"]], axis=1)           # [1, 2*H1]
    w2 = jnp.block([[params["mw2"], jnp.zeros((H1, H2), f32)],
                    [jnp.zeros((H1, H2), f32), params["sw2"]]])            # [2*H1, 2*H2]
    b2 = jnp.concatenate([params["mb2"], params["sb2"]], axis=1)           # [1, 2*H2]
    w3 = jnp.block([[params["mw3"], jnp.zeros((H2, ACT_DIM), f32)],
                    [jnp.zeros((H2, ACT_DIM), f32), params["sw3"]]])       # [2*H2, 2*ACT]
    b3 = jnp.concatenate([params["mb3"], params["sb3"]], axis=1)           # [1, 2*ACT]
    return (w1, b1, w2, b2, w3, b3)


def stocha_policy_forward(obs, packed):
    """obs: [B, OBS_DIM] float32; packed: output of pack_params()."""
    w1, b1, w2, b2, w3, b3 = packed
    B = obs.shape[0]
    tile_b = min(MAX_TILE_B, _round_up(B, 8))
    B_pad = _round_up(B, tile_b)
    if B_pad != B:
        obs = jnp.pad(obs, ((0, B_pad - B), (0, 0)))

    const = lambda a: pl.BlockSpec(a.shape, lambda i: (0, 0))

    out = pl.pallas_call(
        _stocha_policy_kernel,
        out_shape=jax.ShapeDtypeStruct((B_pad, OUT_DIM), jnp.float32),
        grid=(B_pad // tile_b,),
        in_specs=[
            pl.BlockSpec((tile_b, OBS_DIM), lambda i: (i, 0)),
            const(w1), const(b1), const(w2), const(b2), const(w3), const(b3),
        ],
        out_specs=pl.BlockSpec((tile_b, OUT_DIM), lambda i: (i, 0)),
        compiler_params=pltpu.CompilerParams(
            dimension_semantics=("parallel",)),
    )(obs, w1, b1, w2, b2, w3, b3)
    return out[:B]


def init_params(key):
    """Deterministic init.  Weights stored as [in, out] (pre-transposed)."""
    sizes = [OBS_DIM] + list(HIDDEN_SIZES) + [ACT_DIM]
    params = {}
    for prefix in ("m", "s"):   # mean MLP and log_std MLP
        for j in range(len(sizes) - 1):
            key, kw, kb = jax.random.split(key, 3)
            fan_in = sizes[j]
            bound = 1.0 / jnp.sqrt(fan_in)
            params[f"{prefix}w{j + 1}"] = jax.random.uniform(
                kw, (sizes[j], sizes[j + 1]), jnp.float32, -bound, bound
            )
            params[f"{prefix}b{j + 1}"] = jax.random.uniform(
                kb, (1, sizes[j + 1]), jnp.float32, -bound, bound
            )
    return params


def reference_forward(obs, params):
    """Pure-JAX reference (matches the torch module exactly)."""
    def mlp3(x, p):
        h = jnp.tanh(x @ params[p + "w1"] + params[p + "b1"])
        h = jnp.tanh(h @ params[p + "w2"] + params[p + "b2"])
        return h @ params[p + "w3"] + params[p + "b3"]
    mean = mlp3(obs, "m")
    std = jnp.exp(jnp.clip(mlp3(obs, "s"), MIN_LOG_STD, MAX_LOG_STD))
    return jnp.concatenate([mean, std], axis=-1)


if __name__ == "__main__":
    key = jax.random.PRNGKey(0)
    key, k_obs = jax.random.split(key)
    batch = 2
    obs = jax.random.normal(k_obs, (batch, OBS_DIM), jnp.float32)
    params = init_params(key)
    packed = pack_params(params)

    out = stocha_policy_forward(obs, packed)
    out = jax.block_until_ready(out)

    ref = reference_forward(obs, params)
    assert out.shape == (batch, 2 * ACT_DIM)
    assert jnp.allclose(out, ref, atol=1e-5, rtol=1e-5)
    print("KERNEL_OK")
</pallas_src>

<mosaic_0001>
module attributes {stable_mosaic.version = 11 : i64} {
  func.func @_stocha_policy_kernel(%arg0: i32, %arg1: memref<8x16xf32, #tpu.memory_space<vmem>>, %arg2: memref<16x64xf32, #tpu.memory_space<vmem>>, %arg3: memref<1x64xf32, #tpu.memory_space<vmem>>, %arg4: memref<64x64xf32, #tpu.memory_space<vmem>>, %arg5: memref<1x64xf32, #tpu.memory_space<vmem>>, %arg6: memref<64x16xf32, #tpu.memory_space<vmem>>, %arg7: memref<1x16xf32, #tpu.memory_space<vmem>>, %arg8: memref<8x16xf32, #tpu.memory_space<vmem>>) attributes {dimension_semantics = [#tpu.dimension_semantics<parallel>], iteration_bounds = array<i64: 1>, scalar_prefetch = 0 : i64, scratch_operands = 0 : i64, tpu.core_type = #tpu.core_type<tc>, window_params = [{transform_indices = @transform_0, window_bounds = array<i64: 8, 16>}, {pipeline_mode = #tpu.pipeline_mode<synchronous>, transform_indices = @transform_1, window_bounds = array<i64: 16, 64>}, {pipeline_mode = #tpu.pipeline_mode<synchronous>, transform_indices = @transform_2, window_bounds = array<i64: 1, 64>}, {pipeline_mode = #tpu.pipeline_mode<synchronous>, transform_indices = @transform_3, window_bounds = array<i64: 64, 64>}, {pipeline_mode = #tpu.pipeline_mode<synchronous>, transform_indices = @transform_4, window_bounds = array<i64: 1, 64>}, {pipeline_mode = #tpu.pipeline_mode<synchronous>, transform_indices = @transform_5, window_bounds = array<i64: 64, 16>}, {pipeline_mode = #tpu.pipeline_mode<synchronous>, transform_indices = @transform_6, window_bounds = array<i64: 1, 16>}, {transform_indices = @transform_7, window_bounds = array<i64: 8, 16>}]} {
    %c0 = arith.constant 0 : index
    %c0_0 = arith.constant 0 : index
    %0 = vector.load %arg1[%c0, %c0_0] : memref<8x16xf32, #tpu.memory_space<vmem>>, vector<8x16xf32>
    %c0_1 = arith.constant 0 : index
    %c0_2 = arith.constant 0 : index
    %1 = vector.load %arg2[%c0_1, %c0_2] : memref<16x64xf32, #tpu.memory_space<vmem>>, vector<16x64xf32>
    %cst = arith.constant dense<0.000000e+00> : vector<8x64xf32>
    %2 = tpu.matmul %0, %1, %cst {dimension_numbers = #tpu.dot_dimension_numbers<[1], [0], [0], [1], [0, 0, 1, 1], [], []>} : vector<8x16xf32>, vector<16x64xf32>, vector<8x64xf32> -> vector<8x64xf32>
    %c0_3 = arith.constant 0 : index
    %c0_4 = arith.constant 0 : index
    %3 = vector.load %arg3[%c0_3, %c0_4] : memref<1x64xf32, #tpu.memory_space<vmem>>, vector<1x64xf32>
    %4 = vector.broadcast %3 : vector<1x64xf32> to vector<8x64xf32>
    %5 = arith.addf %2, %4 : vector<8x64xf32>
    %6 = math.tanh %5 : vector<8x64xf32>
    %c0_5 = arith.constant 0 : index
    %c0_6 = arith.constant 0 : index
    %7 = vector.load %arg4[%c0_5, %c0_6] : memref<64x64xf32, #tpu.memory_space<vmem>>, vector<64x64xf32>
    %cst_7 = arith.constant dense<0.000000e+00> : vector<8x64xf32>
    %8 = tpu.matmul %6, %7, %cst_7 {dimension_numbers = #tpu.dot_dimension_numbers<[1], [0], [0], [1], [0, 0, 1, 1], [], []>} : vector<8x64xf32>, vector<64x64xf32>, vector<8x64xf32> -> vector<8x64xf32>
    %c0_8 = arith.constant 0 : index
    %c0_9 = arith.constant 0 : index
    %9 = vector.load %arg5[%c0_8, %c0_9] : memref<1x64xf32, #tpu.memory_space<vmem>>, vector<1x64xf32>
    %10 = vector.broadcast %9 : vector<1x64xf32> to vector<8x64xf32>
    %11 = arith.addf %8, %10 : vector<8x64xf32>
    %12 = math.tanh %11 : vector<8x64xf32>
    %c0_10 = arith.constant 0 : index
    %c0_11 = arith.constant 0 : index
    %13 = vector.load %arg6[%c0_10, %c0_11] : memref<64x16xf32, #tpu.memory_space<vmem>>, vector<64x16xf32>
    %cst_12 = arith.constant dense<0.000000e+00> : vector<8x16xf32>
    %14 = tpu.matmul %12, %13, %cst_12 {dimension_numbers = #tpu.dot_dimension_numbers<[1], [0], [0], [1], [0, 0, 1, 1], [], []>} : vector<8x64xf32>, vector<64x16xf32>, vector<8x16xf32> -> vector<8x16xf32>
    %c0_13 = arith.constant 0 : index
    %c0_14 = arith.constant 0 : index
    %15 = vector.load %arg7[%c0_13, %c0_14] : memref<1x16xf32, #tpu.memory_space<vmem>>, vector<1x16xf32>
    %16 = vector.broadcast %15 : vector<1x16xf32> to vector<8x16xf32>
    %17 = arith.addf %14, %16 : vector<8x16xf32>
    %cst_15 = arith.constant -2.000000e+01 : f32
    %cst_16 = arith.constant 2.000000e+00 : f32
    %18 = vector.broadcast %cst_15 : f32 to vector<8x16xf32>
    %19 = arith.maximumf %18, %17 : vector<8x16xf32>
    %20 = vector.broadcast %cst_16 : f32 to vector<8x16xf32>
    %21 = arith.minimumf %20, %19 : vector<8x16xf32>
    %22 = math.exp %21 : vector<8x16xf32>
    %23 = tpu.iota {dimensions = array<i32: 1>} : vector<8x16xi32>
    %c8_i32 = arith.constant 8 : i32
    %24 = vector.broadcast %c8_i32 : i32 to vector<8x16xi32>
    %25 = arith.cmpi sge, %23, %24 : vector<8x16xi32>
    %26 = arith.select %25, %22, %17 : vector<8x16xi1>, vector<8x16xf32>
    %c0_17 = arith.constant 0 : index
    %c0_18 = arith.constant 0 : index
    %27 = vector.load %arg8[%c0_17, %c0_18] : memref<8x16xf32, #tpu.memory_space<vmem>>, vector<8x16xf32>
    tpu.vector_store %arg8[%c0_17, %c0_18], %26 {strides = array<i32>} : memref<8x16xf32, #tpu.memory_space<vmem>>, vector<8x16xf32>,
    return
  }
  func.func @transform_0(%arg0: i32) -> (i32, i32) {
    %c0_i32 = arith.constant 0 : i32
    %c0_i32_0 = arith.constant 0 : i32
    return %arg0, %c0_i32 : i32, i32
  }
  func.func @transform_1(%arg0: i32) -> (i32, i32) {
    %c0_i32 = arith.constant 0 : i32
    %c0_i32_0 = arith.constant 0 : i32
    %c0_i32_1 = arith.constant 0 : i32
    return %c0_i32, %c0_i32_0 : i32, i32
  }
  func.func @transform_2(%arg0: i32) -> (i32, i32) {
    %c0_i32 = arith.constant 0 : i32
    %c0_i32_0 = arith.constant 0 : i32
    %c0_i32_1 = arith.constant 0 : i32
    return %c0_i32, %c0_i32_0 : i32, i32
  }
  func.func @transform_3(%arg0: i32) -> (i32, i32) {
    %c0_i32 = arith.constant 0 : i32
    %c0_i32_0 = arith.constant 0 : i32
    %c0_i32_1 = arith.constant 0 : i32
    return %c0_i32, %c0_i32_0 : i32, i32
  }
  func.func @transform_4(%arg0: i32) -> (i32, i32) {
    %c0_i32 = arith.constant 0 : i32
    %c0_i32_0 = arith.constant 0 : i32
    %c0_i32_1 = arith.constant 0 : i32
    return %c0_i32, %c0_i32_0 : i32, i32
  }
  func.func @transform_5(%arg0: i32) -> (i32, i32) {
    %c0_i32 = arith.constant 0 : i32
    %c0_i32_0 = arith.constant 0 : i32
    %c0_i32_1 = arith.constant 0 : i32
    return %c0_i32, %c0_i32_0 : i32, i32
  }
  func.func @transform_6(%arg0: i32) -> (i32, i32) {
    %c0_i32 = arith.constant 0 : i32
    %c0_i32_0 = arith.constant 0 : i32
    %c0_i32_1 = arith.constant 0 : i32
    return %c0_i32, %c0_i32_0 : i32, i32
  }
  func.func @transform_7(%arg0: i32) -> (i32, i32) {
    %c0_i32 = arith.constant 0 : i32
    %c0_i32_0 = arith.constant 0 : i32
    return %arg0, %c0_i32 : i32, i32
  }
}

</mosaic_0001>

<bundles_post_ra>
// kernel: tpu_custom_call.1
= control target key start
LH: loop header
LB: loop body
LE: loop exit
PB: predicated region body
PF: predicated region fallthrough
CT: control target
= control target key end

     0   :  { %12 = vsyncpa [#allocation3], 0  ;;  %s623_s0 = inlined_call_operand.hbm [shape: f32[8,16], index: 0, kind: input, shape index: {}]   ;;  %s624_s1 = inlined_call_operand.vmem [shape: f32[16,64], index: 1, kind: input, shape index: {}]   ;;  %s625_s2 = inlined_call_operand.vmem [shape: f32[1,64], index: 2, kind: input, shape index: {}]   ;;  %s626_s3 = inlined_call_operand.vmem [shape: f32[64,64], index: 3, kind: input, shape index: {}]   ;;  %s627_s4 = inlined_call_operand.vmem [shape: f32[1,64], index: 4, kind: input, shape index: {}]   ;;  %s628_s5 = inlined_call_operand.vmem [shape: f32[64,16], index: 5, kind: input, shape index: {}]   ;;  %s629_s6 = inlined_call_operand.vmem [shape: f32[1,16], index: 6, kind: input, shape index: {}]   ;;  %s630_s7 = inlined_call_operand.hbm [shape: f32[8,16], index: 7, kind: output, shape index: {}]  }
   0x1   :  { %13 = vsyncpa [#allocation4], 0  ;;  %s484_s24 = smov [#allocation2]   ;;  %s436_s28 = scalar_lea.hbm %s623_s0, 128 }
   0x2   :  { %s20_s25 = sshll.u32 %s484_s24, 4  ;;  %p437_p0 = scmp.ne.s32.totalorder %s623_s0, %s436_s28  ;;  %s21_s25 = int_to_ptr.vmem [resolvable:$true] %s20_s25 }
   0x3   :  { %p440_p1 = scmp.lt.u32.totalorder %s436_s28, %s623_s0 }
   0x5   :  { %p442_p2 = pnand %p440_p1, %p437_p0 }
   0x7   :  { %445 = shalt.err (!%p442_p2)
}
   0x8   :  { %s446_s10 = scalar_lea.vmem %s21_s25, 128  ;;  %p451_p4 = scmp.lt.s32.totalorder %s21_s25, %s21_s25 }
   0x9   :  { %p447_p3 = scmp.ne.s32.totalorder %s21_s25, %s446_s10  ;;  %p452_p5 = scmp.lt.s32.totalorder %s446_s10, %s446_s10 }
   0xb   :  { %p453_p6 = por %p452_p5, %p451_p4 }
   0xd   :  { %p454_p7 = pnand %p453_p6, %p447_p3 }
   0xf   :  { %457 = shalt.err (!%p454_p7)
}
  0x10   :  { %23 = dma.hbm_to_vmem [thread:$0]  %s623_s0, 128, %s21_s25, [#allocation3]  }
  0x11   :  { %480 = dma.done.wait [#allocation3], 128  }
  0x12   :  { %481 = vsyncadd [#allocation3], 4294967168  ;;  %v485_v0 = vmov 0.0|0.0   ;;  %vm486_vm0 = vmmov 0   ;;  %v487_v1 = vmov 0.0   ;;  %v40_v2 = vld [vmem:[%s624_s1] sm:$0xff]  ;;  %v306_v47 = vlaneseq }
  0x13   :  { %398 = vmatprep.subr.bf16.mxu0 %v485_v0  ;;  %357 = vmatprep.mubr.msk.f32.mxu0 %vm486_vm0, %v487_v1  ;;  %v41_v3 = vld [vmem:[%s624_s1 + $0x8] sm:$0xff]  ;;  %v124_v5 = vld [vmem:[%s626_s3] sm:$0xff]  ;;  %vm49_vm1 = vcmask 130048   ;;  %v126_v9 = vld [vmem:[%s626_s3 + $0x10] sm:$0xff]  ;;  %vm139_vm2 = vcmask 523264  }
  0x14   :  { %401 = vmatprep.subr.bf16.mxu1 %v485_v0  ;;  %376 = vmatprep.mubr.msk.f32.mxu1 %vm486_vm0, %v487_v1  ;;  %v399_v4 = vpack.c.bf16 %v41_v3, %v40_v2  ;;  %v125_v6 = vld [vmem:[%s626_s3 + $0x8] sm:$0xff]  ;;  %v39_v8 = vld [vmem:[#allocation2] sm:$0xff]  ;;  %v127_v10 = vld [vmem:[%s626_s3 + $0x18] sm:$0xff]  ;;  %v307_v48 = vand.u32 127, %v306_v47 }
  0x15   :  { %v402_v7 = vpack.c.bf16 %v125_v6, %v124_v5  ;;  %v405_v11 = vpack.c.bf16 %v127_v10, %v126_v9  ;;  %v128_v12 = vld [vmem:[%s626_s3 + $0x20] sm:$0xff]  ;;  %v129_v13 = vld [vmem:[%s626_s3 + $0x28] sm:$0xff]  ;;  %v130_v15 = vld [vmem:[%s626_s3 + $0x30] sm:$0xff] }
  0x16   :  { %400 = vmatpush3.bf16.msra.mxu0 %v399_v4  ;;  %v408_v14 = vpack.c.bf16 %v129_v13, %v128_v12  ;;  %v131_v16 = vld [vmem:[%s626_s3 + $0x38] sm:$0xff]  ;;  %v214_v18 = vld [vmem:[%s628_s5] sm:$0xff]  ;;  %v215_v19 = vld [vmem:[%s628_s5 + $0x8] sm:$0xff]  ;;  %vm308_vm3 = vcmp.ge.s32.totalorder %v307_v48, 8 }
  0x17   :  { %403 = vmatpush3.bf16.msra.mxu1 %v402_v7  ;;  %413 = vmatprep.subr.bf16.mxu0 %v485_v0  ;;  %v411_v17 = vpack.c.bf16 %v131_v16, %v130_v15  ;;  %v414_v20 = vpack.c.bf16 %v215_v19, %v214_v18  ;;  %v326_v21 = vld [vmem:[%s625_s2] ss:$0 sm:$0xff]  ;;  %v216_v26 = vld [vmem:[%s628_s5 + $0x10] sm:$0xff]  ;;  %v217_v27 = vld [vmem:[%s628_s5 + $0x18] sm:$0xff] }
  0x18   :  { %404 = vmatprep.subr.bf16.mxu1 %v485_v0  ;;  %v417_v28 = vpack.c.bf16 %v217_v27, %v216_v26  ;;  %v218_v29 = vld [vmem:[%s628_s5 + $0x20] sm:$0xff]  ;;  %v219_v30 = vld [vmem:[%s628_s5 + $0x28] sm:$0xff]  ;;  %v220_v32 = vld [vmem:[%s628_s5 + $0x30] sm:$0xff] }
  0x19   :  { %358 = vmatmul.mubr.msk.f32.vlgmr.msra.gmra.mrb[0].mxu0 %vm49_vm1, %v39_v8  ;;  %v420_v31 = vpack.c.bf16 %v219_v30, %v218_v29  ;;  %v221_v33 = vld [vmem:[%s628_s5 + $0x38] sm:$0xff]  ;;  %v328_v35 = vld [vmem:[%s627_s4] ss:$0 sm:$0xff]  ;;  %s488_s4 = smov [#allocation5]  }
  0x1a   :  { %395 = vmatprep.mubr.msk.f32.mxu0 %vm486_vm0, %v487_v1  ;;  %415 = vmatpush3.bf16.msra.mxu0 %v414_v20  ;;  %v423_v34 = vpack.c.bf16 %v221_v33, %v220_v32  ;;  %v330_v40 = vld [vmem:[%s629_s6] ss:$0 sm:$0xff]  ;;  %s317_s5 = sshll.u32 %s488_s4, 4  ;;  %s318_s5 = int_to_ptr.vmem [resolvable:$true] %s317_s5 }
  0x1b   :  { %406 = vmatpush3.bf16.msra.mxu1 %v405_v11  ;;  %416 = vmatprep.subr.bf16.mxu0 %v485_v0  ;;  %s458_s26 = scalar_lea.vmem %s318_s5, 128  ;;  %p463_p9 = scmp.lt.s32.totalorder %s318_s5, %s318_s5 }
  0x1c   :  { %407 = vmatprep.subr.bf16.mxu1 %v485_v0  ;;  %p459_p8 = scmp.ne.s32.totalorder %s318_s5, %s458_s26  ;;  %p464_p10 = scmp.lt.s32.totalorder %s458_s26, %s458_s26 }
  0x1e   :  { %418 = vmatpush3.bf16.msra.mxu0 %v417_v28  ;;  %p465_p11 = por %p464_p10, %p463_p9 }
  0x1f   :  { %409 = vmatpush3.bf16.msra.mxu1 %v408_v14  ;;  %419 = vmatprep.subr.bf16.mxu0 %v485_v0 }
  0x20   :  { %410 = vmatprep.subr.bf16.mxu1 %v485_v0  ;;  %p466_p12 = pnand %p465_p11, %p459_p8 }
  0x22   :  { %421 = vmatpush3.bf16.msra.mxu0 %v420_v31 }
  0x23   :  { %412 = vmatpush3.bf16.msra.mxu1 %v411_v17  ;;  %422 = vmatprep.subr.bf16.mxu0 %v485_v0 }
  0x26   :  { %424 = vmatpush3.bf16.msra.mxu0 %v423_v34 }
  0xec   :  { %v119_v22 = vpop.f32.mrb[0].mxu0 }
  0xed   :  { %v120_v23 = vadd.f32 %v326_v21, %v119_v22  ;;  %v359_v24 = vpop.f32.mrb[1].mxu0 }
  0xef   :  { %430 = vtanh.f32 %v120_v23 }
  0xf9   :  { %v431_v25 = vpop.eup %430 }
  0xfa   :  { %377 = vmatmul.mubr.msk.f32.vlgmr.msra.gmra.mrb[0].mxu1 %vm139_vm2, %v431_v25 }
 0x1cd   :  { %v209_v36 = vpop.f32.mrb[0].mxu1 }
 0x1ce   :  { %v210_v37 = vadd.f32 %v328_v35, %v209_v36  ;;  %v378_v38 = vpop.f32.mrb[1].mxu1 }
 0x1d0   :  { %432 = vtanh.f32 %v210_v37 }
 0x1da   :  { %v433_v39 = vpop.eup %432 }
 0x1db   :  { %396 = vmatmul.mubr.msk.f32.vlgmr.msra.gmra.mrb[2].mxu0 %vm139_vm2, %v433_v39 }
 0x2ae   :  { %v298_v41 = vpop.f32.mrb[2].mxu0 }
 0x2af   :  { %v299_v42 = vadd.f32 %v330_v40, %v298_v41  ;;  %v397_v43 = vpop.f32.mrb[3].mxu0 }
 0x2b1   :  { %v302_v44 = vmax.f32 %v299_v42, -20.0 }
 0x2b3   :  { %v303_v45 = vmin.f32 %v302_v44, 2.0 }
 0x2b5   :  { %v304_v46 = vmul.f32 1.442695, %v303_v45 }
 0x2b7   :  { %434 = vpow2.f32 %v304_v46 }
 0x2c1   :  { %v435_v49 = vpop.eup %434 }
 0x2c2   :  { %v309_v50 = vsel %vm308_vm3, %v435_v49, %v299_v42 }
 0x2c3   :  { %310 = vst.msk [vmem:[#allocation5] sm:$0xff] %vm49_vm1, %v309_v50 }
 0x2c4   :  { %469 = shalt.err (!%p466_p12)
}
 0x2c5   :  { %s470_s28 = scalar_lea.hbm %s630_s7, 128 }
 0x2c6   :  { %p471_p13 = scmp.ne.s32.totalorder %s630_s7, %s470_s28  ;;  %p474_p0 = scmp.lt.u32.totalorder %s470_s28, %s630_s7 }
 0x2c8   :  { %p476_p1 = pnand %p474_p0, %p471_p13 }
 0x2ca   :  { %479 = shalt.err (!%p476_p1)
}
 0x2cb   :  { %320 = dma.vmem_to_hbm [thread:$0]  %s318_s5, 128, %s630_s7, [#allocation4]  }
 0x2cc   :  { %482 = dma.done.wait [#allocation4], 128  }
 0x2cd   :  { %483 = vsyncadd [#allocation4], 4294967168 }
 0x2ce   :  { %324 = vsyncpa [#allocation3], 1 }
 0x2cf   :  { %325 = vsyncpa [#allocation4], 1 }

</bundles_post_ra>
